<compile_context>
chip_gen: v5e
topology: v5e:2x2
jax: 0.10.0
libtpu: 0.0.40
codegen_flags: <defaults>
</compile_context>

<pallas_src>
import math

import jax
import jax.numpy as jnp
from jax.experimental import pallas as pl
from jax.experimental.pallas import tpu as pltpu

THRESHOLD = 1.0
LAM = 0.5
_LANE = 128


def _ipsu_kernel(m_ref, x_ref, o_ref):
    # m_ref : (T, T)      fused matrix, resident across all grid steps
    # x_ref : (1, T, Dt)  one batch element, one feature tile
    # o_ref : (1, T, Dt)
    u = jnp.dot(m_ref[...], x_ref[0], preferred_element_type=jnp.float32)
    # spike = heaviside(M @ x - threshold)  ==  (M @ x >= threshold)
    # (surrogate forward defines heaviside(0) = 1, matching `>=`)
    o_ref[0] = (u >= THRESHOLD).astype(o_ref.dtype)


def _num_tensorcores():
    """Best-effort count of TensorCores served by one JAX device (perf only)."""
    try:
        kind = jax.devices()[0].device_kind.lower()
    except Exception:
        return 1
    if "lite" in kind or "v5e" in kind or "v6e" in kind:
        return 1                      # v5e / v6e: one TensorCore per chip
    for tag in ("v5p", "v4", "7x", "v7"):
        if tag in kind:
            return 2                  # megacore (v4/v5p) or v7x: two TCs
    return 1


def _pick_d_tile(D, T, B, num_tc, itemsize, vmem_budget=12 << 20):
    """Feature-tile width from a VMEM byte budget (the op is HBM-bound).

    Live per-step VMEM ~= 2x input block + 2x output block (double
    buffering) + one f32 matmul result  ->  T * (4*itemsize + 4) bytes per
    feature column.  12 MiB stays under every default scoped-VMEM limit
    (v5e 16 MiB, v6e/v7x 32 MiB) with headroom for the tiny (T,T) operand.
    """
    per_col = T * (4 * itemsize + 4)
    d_max = max(_LANE, (vmem_budget // per_col) // _LANE * _LANE)
    d_tile = D if D <= d_max else d_max
    # Multi-TensorCore chips: keep >= 4 balanced "parallel" steps per core so
    # megacore sharding has work to pipeline.  Single-TC chips skip the split.
    if num_tc > 1 and D > _LANE:
        target_steps = 4 * num_tc
        if B * pl.cdiv(D, d_tile) < target_steps:
            nd_needed = pl.cdiv(target_steps, B)
            dt = max(_LANE, (pl.cdiv(D, nd_needed) // _LANE) * _LANE)
            d_tile = min(d_tile, dt)
    return d_tile


def ipsu_forward(x_seq, fc_weight):
    """IPSU forward.  x_seq: (B, T, *rest) float.  fc_weight: (T, T) float."""
    B, T = x_seq.shape[:2]
    rest = x_seq.shape[2:]
    D = int(math.prod(rest)) if rest else 1

    dtype = x_seq.dtype if jnp.issubdtype(x_seq.dtype, jnp.floating) else jnp.float32
    x = x_seq.reshape(B, T, D).astype(dtype)

    # Lambda[i, j] = lam**(i-j) for j <= i else 0.  Powers are built from
    # Python floats (no traced float exponent -> safe for any lam, incl. 0).
    powers = jnp.asarray([LAM ** k for k in range(T)], dtype=jnp.float32)
    ii = jnp.arange(T, dtype=jnp.int32)[:, None]
    jj = jnp.arange(T, dtype=jnp.int32)[None, :]
    Lambda = jnp.where(jj <= ii, powers[jnp.clip(ii - jj, 0, T - 1)], 0.0)
    Wtril = jnp.tril(fc_weight.astype(jnp.float32))
    # Fused:  u = W@x - (Lambda - I)@(Lambda@x) - thr
    #           = (W + Lambda - Lambda@Lambda) @ x - thr
    M = (Wtril + Lambda - Lambda @ Lambda).astype(dtype)

    itemsize = jnp.dtype(dtype).itemsize
    num_tc = _num_tensorcores()
    d_tile = _pick_d_tile(D, T, B, num_tc, itemsize)
    nd = pl.cdiv(D, d_tile)   # ragged last tile handled by Pallas (no pad/slice)

    out = pl.pallas_call(
        _ipsu_kernel,
        out_shape=jax.ShapeDtypeStruct((B, T, D), dtype),
        grid_spec=pltpu.PrefetchScalarGridSpec(
            num_scalar_prefetch=0,
            grid=(B, nd),
            in_specs=[
                pl.BlockSpec((T, T), lambda b, d: (0, 0)),             # fused M (resident)
                pl.BlockSpec((1, T, d_tile), lambda b, d: (b, 0, d)),  # x tile
            ],
            out_specs=pl.BlockSpec((1, T, d_tile), lambda b, d: (b, 0, d)),
        ),
        compiler_params=pltpu.CompilerParams(
            dimension_semantics=("parallel", "parallel")),
        cost_estimate=pl.CostEstimate(
            flops=2 * B * T * T * D,
            bytes_accessed=(2 * B * T * D + T * T) * itemsize,
            transcendentals=0),
    )(M, x)

    return out.reshape(B, T, *rest)


if __name__ == "__main__":
    # Small shapes consistent with the module: (batch, T, C, H, W)
    B, T, C, H, W = 2, 8, 4, 16, 16

    key = jax.random.PRNGKey(0)
    kx, kw = jax.random.split(key)
    x_seq = jax.random.normal(kx, (B, T, C, H, W), dtype=jnp.float32)

    # nn.Linear(T, T, bias=False) default init: U(-1/sqrt(T), 1/sqrt(T))
    bound = 1.0 / math.sqrt(T)
    fc_weight = jax.random.uniform(kw, (T, T), jnp.float32, -bound, bound)

    spike = ipsu_forward(x_seq, fc_weight)
    jax.block_until_ready(spike)
    assert spike.shape == (B, T, C, H, W)

    # Reference check (pure JAX, unfused, matching the PyTorch op order).
    xf = x_seq.reshape(B, T, -1)
    ii = jnp.arange(T)[:, None]
    jj = jnp.arange(T)[None, :]
    powers = jnp.asarray([LAM ** k for k in range(T)], jnp.float32)
    Lam = jnp.where(jj <= ii, powers[jnp.clip(ii - jj, 0, T - 1)], 0.0)
    A = Lam - jnp.eye(T, dtype=jnp.float32)
    u_ref = (jnp.einsum('tk,bkd->btd', jnp.tril(fc_weight), xf)
             - jnp.einsum('tk,bkd->btd', A, jnp.einsum('tk,bkd->btd', Lam, xf))
             - THRESHOLD)
    ref = (u_ref >= 0.0).astype(jnp.float32)
    mismatch = spike.reshape(B, T, -1) != ref
    # The algebraic fusion changes rounding slightly; only require agreement
    # where u is clearly away from the spiking boundary.
    assert not bool(jnp.any(mismatch & (jnp.abs(u_ref) > 1e-4)))

    print("KERNEL_OK")
</pallas_src>

<mosaic_0001>
module attributes {stable_mosaic.version = 11 : i64} {
  func.func @_ipsu_kernel(%arg0: i32, %arg1: i32, %arg2: memref<8x8xf32, #tpu.memory_space<vmem>>, %arg3: memref<1x8x1024xf32, #tpu.memory_space<vmem>>, %arg4: memref<1x8x1024xf32, #tpu.memory_space<vmem>>) attributes {dimension_semantics = [#tpu.dimension_semantics<parallel>, #tpu.dimension_semantics<parallel>], iteration_bounds = array<i64: 2, 1>, scalar_prefetch = 0 : i64, scratch_operands = 0 : i64, tpu.core_type = #tpu.core_type<tc>, window_params = [{pipeline_mode = #tpu.pipeline_mode<synchronous>, transform_indices = @transform_0, window_bounds = array<i64: 8, 8>}, {transform_indices = @transform_1, window_bounds = array<i64: 1, 8, 1024>}, {transform_indices = @transform_2, window_bounds = array<i64: 1, 8, 1024>}]} {
    %c0 = arith.constant 0 : index
    %c0_0 = arith.constant 0 : index
    %0 = vector.load %arg2[%c0, %c0_0] : memref<8x8xf32, #tpu.memory_space<vmem>>, vector<8x8xf32>
    %c0_1 = arith.constant 0 : index
    %c0_2 = arith.constant 0 : index
    %c0_3 = arith.constant 0 : index
    %1 = vector.load %arg3[%c0_1, %c0_2, %c0_3] : memref<1x8x1024xf32, #tpu.memory_space<vmem>>, vector<1x8x1024xf32>
    %2 = vector.shape_cast %1 : vector<1x8x1024xf32> to vector<8x1024xf32>
    %cst = arith.constant dense<0.000000e+00> : vector<8x1024xf32>
    %3 = tpu.matmul %0, %2, %cst {dimension_numbers = #tpu.dot_dimension_numbers<[1], [0], [0], [1], [0, 0, 1, 1], [], []>} : vector<8x8xf32>, vector<8x1024xf32>, vector<8x1024xf32> -> vector<8x1024xf32>
    %cst_4 = arith.constant 1.000000e+00 : f32
    %4 = vector.broadcast %cst_4 : f32 to vector<8x1024xf32>
    %5 = arith.cmpf oge, %3, %4 : vector<8x1024xf32>
    %6 = arith.extui %5 : vector<8x1024xi1> to vector<8x1024xi32>
    %7 = arith.sitofp %6 : vector<8x1024xi32> to vector<8x1024xf32>
    %c0_5 = arith.constant 0 : index
    %c0_6 = arith.constant 0 : index
    %c0_7 = arith.constant 0 : index
    %8 = vector.load %arg4[%c0_5, %c0_6, %c0_7] : memref<1x8x1024xf32, #tpu.memory_space<vmem>>, vector<1x8x1024xf32>
    %9 = vector.shape_cast %8 : vector<1x8x1024xf32> to vector<8x1024xf32>
    %10 = vector.shape_cast %7 : vector<8x1024xf32> to vector<1x8x1024xf32>
    tpu.vector_store %arg4[%c0_5, %c0_6, %c0_7], %10 {strides = array<i32>} : memref<1x8x1024xf32, #tpu.memory_space<vmem>>, vector<1x8x1024xf32>,
    return
  }
  func.func @transform_0(%arg0: i32, %arg1: i32) -> (i32, i32) {
    %c0_i32 = arith.constant 0 : i32
    %c0_i32_0 = arith.constant 0 : i32
    %c0_i32_1 = arith.constant 0 : i32
    return %c0_i32, %c0_i32_0 : i32, i32
  }
  func.func @transform_1(%arg0: i32, %arg1: i32) -> (i32, i32, i32) {
    %c0_i32 = arith.constant 0 : i32
    %c0_i32_0 = arith.constant 0 : i32
    return %arg0, %c0_i32, %arg1 : i32, i32, i32
  }
  func.func @transform_2(%arg0: i32, %arg1: i32) -> (i32, i32, i32) {
    %c0_i32 = arith.constant 0 : i32
    %c0_i32_0 = arith.constant 0 : i32
    return %arg0, %c0_i32, %arg1 : i32, i32, i32
  }
}

</mosaic_0001>

<bundles_post_ra>
// kernel: tpu_custom_call.1
= control target key start
LH: loop header
LB: loop body
LE: loop exit
PB: predicated region body
PF: predicated region fallthrough
CT: control target
= control target key end

     0   :  { %7 = vsyncpa [#allocation3], 0  ;;  %s963_s0 = inlined_call_operand.hbm [shape: f32[8,8], index: 0, kind: input, shape index: {}]   ;;  %s964_s1 = inlined_call_operand.hbm [shape: f32[2,8,1024], index: 1, kind: input, shape index: {}]   ;;  %s965_s2 = inlined_call_operand.hbm [shape: f32[2,8,1024], index: 2, kind: output, shape index: {}]  }
   0x1   :  { %8 = vsyncpa [#allocation6], 0 }
   0x2   :  { %10 = vsyncpa [#allocation6 + $0x1], 0 }
   0x3   :  { %11 = vsyncpa [#allocation4], 0 }
   0x4   :  { %13 = vsyncpa [#allocation4 + $0x1], 0  ;;  %s791_s9 = smov 0   ;;  %s793_s10 = smov 0  }
   0x5   :  { %s795_s11 = smov 0   ;;  %s797_s12 = smov 0  }
   0x6   :  { %s799_s13 = smov 0   ;;  %s801_s14 = smov 0  }
   0x7 LB: > { %s517_s15 = sadd.s32 4294967295, %s772_s14   ;;  %s518_s16 = sadd.s32 4294967294, %s772_s14   ;;  %s772_s14 = sphi %s801_s14, %s19_s14   ;;  %s768_s13 = sphi %s799_s13, %s977_s13   ;;  %s764_s12 = sphi %s797_s12, %s976_s12   ;;  %s760_s11 = sphi %s795_s11, %s975_s11   ;;  %s756_s10 = sphi %s793_s10, %s974_s10   ;;  %s752_s9 = sphi %s791_s9, %s973_s9  }
   0x8   : > { %p74_p0 = scmp.ne.s32.totalorder %s756_s10, %s752_s9  ;;  %p825_p1 = scmp.eq.s32.totalorder %s517_s15, 0 }
   0x9   : > { %p829_p2 = scmp.eq.s32.totalorder %s517_s15, 1  ;;  %p106_p3 = scmp.eq.s32.totalorder %s518_s16, 1 }
   0xa   : > { %p835_p4 = por %p825_p1, %p74_p0  ;;  %p519_p5 = scmp.ge.s32.totalorder %s772_s14, 1 }
   0xb   : > { %p840_p6 = por %p106_p3, %p74_p0  ;;  %p113_p7 = scmp.lt.s32.totalorder %s772_s14, 3 }
   0xc   : > { %s125_s23 = sshll.u32 %s963_s0, 4  ;;  %p521_p9 = scmp.ge.s32.totalorder %s772_s14, 2  ;;  %s126_s23 = int_to_ptr.hbm [resolvable:$true] %s125_s23 }
   0xd   : > { %p848_p8 = pnand %p519_p5, %p113_p7  ;;  %s774_s25 = smov [#allocation2]  }
   0xe   : > { %s127_s26 = sshll.u32 %s774_s25, 4  ;;  %s31_s27 = sadd.s32 1, %s768_s13  ;;  %s128_s26 = int_to_ptr.vmem [resolvable:$true] %s127_s26 }
   0xf   : > { %p560_p10 = pneg %p848_p8  ;;  %p33_p12 = scmp.ge.s32.totalorder %s31_s27, 2 }
  0x10   : > { %s61_s28 = sadd.s32 1, %s760_s11  ;;  %p68_p13 = scmp.ne.s32.totalorder %s760_s11, %s756_s10 }
  0x11   : > { %p561_p11 = pnand %p560_p10, %p825_p1  ;;  %p69_p0 = scmp.eq.s32.totalorder %s772_s14, 0 }
  0x12   : > { %s979_s27 = smov (%p33_p12, %s31_s27), 0  ;;  %p870_p5 = por %p829_p2, %p68_p13 }
  0x13   : > { %563 = dma.hbm_to_vmem [thread:$0]  (!%p561_p11), %s126_s23, 128, %s128_s26, [#allocation3]  }
  0x14   : > { %p864_p3 = por %p69_p0, %p68_p13  ;;  %s56_s3 = ssub.s32 %s768_s13, %s979_s27 }
  0x15   : > { %p573_p7 = scmp.lt.s32.totalorder %s772_s14, 2  ;;  %p59_p10 = scmp.eq.s32.totalorder %s56_s3, 0 }
  0x16   : > { %s138_s4 = sand.u32 1, %s760_s11   ;;  %s550_s7 = sshll.u32 %s768_s13, 6 }
  0x17   : > { %s522_s5 = sshll.u32 %s138_s4, 6  ;;  %s149_s16 = scalar_lea.hbm %s964_s1, %s550_s7 }
  0x18   : > { %s879_s6 = scalar_select %p59_p10, %s760_s11, %s61_s28  }
  0x19   : > { %s142_s21 = scalar_lea.vmem [#allocation5], %s522_s5  ;;  %s151_s18 = sshll.u32 %s149_s16, 4  ;;  %s152_s18 = int_to_ptr.hbm [resolvable:$true] %s151_s18 }
  0x1a   : > { %s153_s22 = sshll.u32 %s142_s21, 4  ;;  %p565_p2 = pnand %p573_p7, %p864_p3  ;;  %s154_s22 = int_to_ptr.vmem [resolvable:$true] %s153_s22 }
  0x1b   : > { %s139_s23 = scalar_lea.sflag [#allocation6], %s138_s4  ;;  %162 = sbr.rel (%p848_p8) target bundleno = 185 (0xb9), region = 28 }
  0x1c   : > { %567 = dma.hbm_to_vmem [thread:$0]  (!%p565_p2), %s152_s18, 1024, %s154_s22, %s139_s23  }
  0x20   : > { %739 = dma.done.wait (%p825_p1), [#allocation3], 128  }
  0x21   : > { %741 = vsyncadd (%p825_p1), [#allocation3], 4294967168  ;;  %s894_s25 = sand.u32 1, %s756_s10  }
  0x22   : > { %s527_s26 = sshll.u32 %s894_s25, 6  ;;  %s170_s28 = scalar_lea.sflag [#allocation6], %s894_s25 }
  0x23   : > { %s173_s29 = scalar_lea.vmem [#allocation5], %s527_s26 }
  0x24   : > { %743 = dma.done.wait (%p835_p4), %s170_s28, 1024  }
  0x25   : > { %745 = vsyncadd (%p835_p4), %s170_s28, 4294966272  ;;  %vm206_vm0 = vcmask 64512   ;;  %v200_v0 = vld [vmem:[%s173_s29 + $0x10] sm:$0xff]  ;;  %v201_v1 = vld [vmem:[%s173_s29 + $0x18] sm:$0xff]  ;;  %v775_v11 = vmov 0.0   ;;  %s914_s17 = scalar_lea.vmem [#allocation7], %s527_s26 }
  0x26   : > { %v197_v2 = vld [vmem:[#allocation2] sm:$0xff]  ;;  %265 = vmatpush.msra.mxu2 %v200_v0  ;;  %285 = vmatpush.msra.mxu3 %v201_v1  ;;  %v204_v3 = vld [vmem:[%s173_s29 + $0x30] sm:$0xff]  ;;  %v198_v5 = vld [vmem:[%s173_s29] sm:$0xff]  ;;  %s551_s19 = sshll.u32 %s764_s12, 6  ;;  %s418_s5 = sshll.u32 %s914_s17, 4  ;;  %s419_s5 = int_to_ptr.vmem [resolvable:$true] %s418_s5 }
  0x27   : > { %v205_v4 = vld [vmem:[%s173_s29 + $0x38] sm:$0xff]  ;;  %531 = vmatmul.msk.f32.vlgmr.msra.gmra.mxu2 %vm206_vm0, %v197_v2  ;;  %532 = vmatmul.msk.f32.vlgmr.msra.gmra.mxu3 %vm206_vm0, %v197_v2  ;;  %v199_v6 = vld [vmem:[%s173_s29 + $0x8] sm:$0xff]  ;;  %v202_v7 = vld [vmem:[%s173_s29 + $0x20] sm:$0xff]  ;;  %s416_s4 = scalar_lea.hbm %s965_s2, %s551_s19  ;;  %s403_s7 = scalar_lea.sflag [#allocation4], %s894_s25 }
  0x28   : > { %345 = vmatpush.msrb.mxu2 %v204_v3  ;;  %365 = vmatpush.msrb.mxu3 %v205_v4  ;;  %v203_v8 = vld [vmem:[%s173_s29 + $0x28] sm:$0xff]  ;;  %s420_s12 = sshll.u32 %s416_s4, 4  ;;  %s706_s22 = scalar_lea.hbm %s965_s2, 128  ;;  %s421_s12 = int_to_ptr.hbm [resolvable:$true] %s420_s12 }
  0x29   : > { %225 = vmatpush.msra.mxu0 %v198_v5  ;;  %245 = vmatpush.msra.mxu1 %v199_v6  ;;  %s700_s8 = sshra.s32 %s421_s12, 4  ;;  %s701_s8 = int_to_ptr.hbm [resolvable:$true] %s700_s8 }
  0x2a   : > { %529 = vmatmul.msk.f32.vlgmr.msra.gmra.mxu0 %vm206_vm0, %v197_v2  ;;  %530 = vmatmul.msk.f32.vlgmr.msra.gmra.mxu1 %vm206_vm0, %v197_v2  ;;  %s702_s15 = scalar_lea.hbm %s701_s8, 64  ;;  %p707_p11 = scmp.lt.s32.totalorder %s701_s8, %s965_s2 }
  0x2b   : > { %305 = vmatpush.msrb.mxu0 %v202_v7  ;;  %325 = vmatpush.msrb.mxu1 %v203_v8  ;;  %p703_p1 = scmp.ne.s32.totalorder %s701_s8, %s702_s15  ;;  %p708_p12 = scmp.lt.s32.totalorder %s706_s22, %s702_s15 }
  0x2d   : > { %p704_p4 = pnand %p703_p1, %p870_p5  ;;  %p709_p13 = por %p708_p12, %p707_p11 }
  0x2f   : > { %535 = vmatmul.msk.f32.vlgmr.msrb.gmra.mxu2 %vm206_vm0, %v197_v2  ;;  %536 = vmatmul.msk.f32.vlgmr.msrb.gmra.mxu3 %vm206_vm0, %v197_v2  ;;  %p705_p8 = pneg %p704_p4 }
  0x31   : > { %p710_p0 = pnand %p709_p13, %p705_p8 }
  0x32   : > { %533 = vmatmul.msk.f32.vlgmr.msrb.gmra.mxu0 %vm206_vm0, %v197_v2  ;;  %534 = vmatmul.msk.f32.vlgmr.msrb.gmra.mxu1 %vm206_vm0, %v197_v2 }
  0xa7   : > { %v227_v9 = vpop.f32.mrf.mxu0  ;;  %v247_v10 = vpop.f32.mrf.mxu1 }
  0xa8   : > { %vm370_vm1 = vcmp.ge.f32.partialorder %v227_v9, 1.0  ;;  %vm371_vm2 = vcmp.ge.f32.partialorder %v247_v10, 1.0 }
  0xa9   : > { %v537_v12 = vsel %vm370_vm1, 1.0, %v775_v11  ;;  %v538_v13 = vsel %vm371_vm2, 1.0, %v775_v11 }
  0xaa   : > { %394 = vst [vmem:[%s914_s17] sm:$0xff] %v537_v12  ;;  %v267_v14 = vpop.f32.mrf.mxu2  ;;  %v287_v15 = vpop.f32.mrf.mxu3 }
  0xab   : > { %395 = vst [vmem:[%s914_s17 + $0x8] sm:$0xff] %v538_v13  ;;  %vm372_vm3 = vcmp.ge.f32.partialorder %v267_v14, 1.0  ;;  %vm373_vm4 = vcmp.ge.f32.partialorder %v287_v15, 1.0 }
  0xac   : > { %v539_v16 = vsel %vm372_vm3, 1.0, %v775_v11  ;;  %v540_v17 = vsel %vm373_vm4, 1.0, %v775_v11 }
  0xad   : > { %396 = vst [vmem:[%s914_s17 + $0x10] sm:$0xff] %v539_v16 }
  0xae   : > { %397 = vst [vmem:[%s914_s17 + $0x18] sm:$0xff] %v540_v17 }
  0xaf   : > { %v307_v18 = vpop.f32.mrf.mxu0  ;;  %v327_v19 = vpop.f32.mrf.mxu1 }
  0xb0   : > { %vm374_vm5 = vcmp.ge.f32.partialorder %v307_v18, 1.0  ;;  %vm375_vm6 = vcmp.ge.f32.partialorder %v327_v19, 1.0 }
  0xb1   : > { %v541_v20 = vsel %vm374_vm5, 1.0, %v775_v11  ;;  %v542_v21 = vsel %vm375_vm6, 1.0, %v775_v11 }
  0xb2   : > { %398 = vst [vmem:[%s914_s17 + $0x20] sm:$0xff] %v541_v20  ;;  %v347_v22 = vpop.f32.mrf.mxu2  ;;  %v367_v23 = vpop.f32.mrf.mxu3 }
  0xb3   : > { %399 = vst [vmem:[%s914_s17 + $0x28] sm:$0xff] %v542_v21  ;;  %vm376_vm7 = vcmp.ge.f32.partialorder %v347_v22, 1.0  ;;  %vm377_vm8 = vcmp.ge.f32.partialorder %v367_v23, 1.0 }
  0xb4   : > { %v543_v24 = vsel %vm376_vm7, 1.0, %v775_v11  ;;  %v544_v25 = vsel %vm377_vm8, 1.0, %v775_v11 }
  0xb5   : > { %400 = vst [vmem:[%s914_s17 + $0x30] sm:$0xff] %v543_v24 }
  0xb6   : > { %401 = vst [vmem:[%s914_s17 + $0x38] sm:$0xff] %v544_v25 }
  0xb7   : > { %713 = shalt.err (!%p710_p0)
}
  0xb8   : > { %558 = dma.vmem_to_hbm [thread:$0]  (%p870_p5), %s419_s5, 1024, %s421_s12, %s403_s7  }
  0xb9 PF: > { %s432_s25 = sand.u32 1, %s752_s9   ;;  %p569_p3 = pnand %p521_p9, %p840_p6 }
  0xba   : > { %s433_s26 = scalar_lea.sflag [#allocation4], %s432_s25 }
  0xbb   : > { %p570_p7 = pneg %p569_p3 }
  0xbd   : > { %747 = dma.done.wait (%p570_p7), %s433_s26, 1024  }
  0xbe   : > { %749 = vsyncadd (%p570_p7), %s433_s26, 4294966272  ;;  %s19_s14 = sadd.s32 1, %s772_s14   ;;  %s973_s9 = smov %s756_s10 }
  0xbf   : > { %p16_p10 = scmp.ge.s32.totalorder %s19_s14, 4   ;;  %s974_s10 = smov %s760_s11 }
  0xc0   : > { %s975_s11 = smov %s879_s6  ;;  %s976_s12 = smov %s768_s13 }
  0xc1   : > { %s977_s13 = smov %s979_s27  ;;  %18 = sbr.rel (!%p16_p10) target bundleno = 7 (0x7), region = 78 }
  0xc6   :  { %439 = vsyncpa [#allocation3], 1 }
  0xc7   :  { %441 = vsyncpa [#allocation3 + $0x1], 1 }
  0xc8   :  { %442 = vsyncpa [#allocation6], 1 }
  0xc9   :  { %444 = vsyncpa [#allocation6 + $0x1], 1 }
  0xca   :  { %445 = vsyncpa [#allocation4], 1 }
  0xcb   :  { %447 = vsyncpa [#allocation4 + $0x1], 1 }

</bundles_post_ra>
